<compile_context>
chip_gen: v6e
topology: v6e:2x2x1
jax: 0.10.0
libtpu: 0.0.40
codegen_flags: <defaults>
</compile_context>

<pallas_src>
import jax
import jax.numpy as jnp
from jax.experimental import pallas as pl
from jax.experimental.pallas import tpu as pltpu

_EPS = 1e-5
_LANE = 128      # TPU lane width: channel dims are padded to a multiple of this
_TM = 256        # rows (N*Hout*Wout) per grid step
_HI = jax.lax.Precision.HIGHEST   # only used by the pure-JAX gold reference


# --------------------------------------------------------------------------
# Kernels
# --------------------------------------------------------------------------
def _conv_stats_kernel(x_ref, w_ref, y_ref, stats_ref):
    """Conv-as-matmul tile + fused one-pass BN statistics epilogue.

    x_ref:     (TM, K)     bf16 im2col tile
    w_ref:     (K, Cpad)   bf16 reshaped conv weights (output channels padded)
    y_ref:     (TM, Cpad)  f32 conv output tile (lane-dense stores)
    stats_ref: (8, Cpad)   f32; row 0 = per-channel sum, row 1 = sum of squares
    """
    y = jnp.dot(x_ref[...], w_ref[...], preferred_element_type=jnp.float32)
    y_ref[...] = y
    s = jnp.sum(y, axis=0, keepdims=True)
    ss = jnp.sum(y * y, axis=0, keepdims=True)
    rid = jax.lax.broadcasted_iota(jnp.int32, stats_ref.shape, 0)
    stats_ref[...] = jnp.where(rid == 0, s, jnp.where(rid == 1, ss, 0.0))


def _bn_relu_kernel(y_ref, scale_ref, shift_ref, o_ref):
    """h = relu(scale * y + shift)   (BN folded into a per-channel affine)."""
    o_ref[...] = jnp.maximum(y_ref[...] * scale_ref[...] + shift_ref[...], 0.0)


def _bn_add_relu_kernel(y_ref, sc_ref, scale_ref, shift_ref, o_ref):
    """out = relu(bn2(y) + identity_shortcut)."""
    o_ref[...] = jnp.maximum(
        y_ref[...] * scale_ref[...] + shift_ref[...] + sc_ref[...], 0.0)


def _bn_conv1x1_add_relu_kernel(y_ref, xs_ref, w3_ref, b3_ref,
                                scale_ref, shift_ref, o_ref):
    """out = relu(bn2(y) + (x @ w3 + b3))   (1x1-conv shortcut fused here)."""
    sc = jnp.dot(xs_ref[...], w3_ref[...],
                 preferred_element_type=jnp.float32) + b3_ref[...]
    o_ref[...] = jnp.maximum(
        y_ref[...] * scale_ref[...] + shift_ref[...] + sc, 0.0)


# --------------------------------------------------------------------------
# Wrapper-side helpers
# --------------------------------------------------------------------------
def _round_up(x, m):
    return (x + m - 1) // m * m


def _compiler_params():
    return pltpu.CompilerParams(
        dimension_semantics=("parallel",),          # megacore / v7x 2-TC sharding
        vmem_limit_bytes=32 * 1024 * 1024)          # well under v7x's 64 MiB


def _im2col_3x3(x_nhwc, stride, Hout, Wout):
    """(N,H,W,C), pad=1 -> (N*Hout*Wout, 9*C).  Stride handled here, in XLA."""
    # TODO(synk): for large activations, fuse im2col into the conv kernel via
    # overlapping-row BlockSpecs (halo reads) to avoid the 9x HBM expansion.
    N, _, _, C = x_nhwc.shape
    xp = jnp.pad(x_nhwc, ((0, 0), (1, 1), (1, 1), (0, 0)))
    cols = []
    for ky in range(3):
        for kx in range(3):
            he = ky + (Hout - 1) * stride + 1
            we = kx + (Wout - 1) * stride + 1
            tap = xp[:, ky:he:stride, kx:we:stride, :]
            cols.append(tap.reshape(N * Hout * Wout, C))
    # Column order matches w.reshape(9*C, Cout) for HWIO weights.
    return jnp.concatenate(cols, axis=-1)


def _conv_bn_stats(lhs, w, count):
    """Tiled conv-as-matmul with fused one-pass BN statistics.

    lhs: (rows_pad, K) bf16,  w: (K, Cpad) bf16.
    Returns y (rows_pad, Cpad) f32 and per-channel (mean, biased var) over the
    true `count` rows.  Zero-padded rows contribute exactly 0 to sum/sumsq
    because the kernel-path conv has no bias.
    """
    rows_pad, K = lhs.shape
    Cpad = w.shape[1]
    n_tiles = rows_pad // _TM
    y, stats = pl.pallas_call(
        _conv_stats_kernel,
        out_shape=(jax.ShapeDtypeStruct((rows_pad, Cpad), jnp.float32),
                   jax.ShapeDtypeStruct((n_tiles * 8, Cpad), jnp.float32)),
        grid=(n_tiles,),
        in_specs=[pl.BlockSpec((_TM, K), lambda i: (i, 0)),
                  pl.BlockSpec((K, Cpad), lambda i: (0, 0))],
        out_specs=(pl.BlockSpec((_TM, Cpad), lambda i: (i, 0)),
                   pl.BlockSpec((8, Cpad), lambda i: (i, 0))),
        compiler_params=_compiler_params(),
    )(lhs, w)
    tot = jnp.sum(stats.reshape(n_tiles, 8, Cpad), axis=0)   # fold tile partials
    mean = tot[0] / count
    var = jnp.maximum(tot[1] / count - mean * mean, 0.0)     # biased (train-mode)
    return y, mean, var


def _bn_scale_shift(mean, var, gamma, beta):
    inv = jax.lax.rsqrt(var + _EPS)
    scale = gamma * inv
    shift = beta - mean * scale
    return scale.reshape(1, -1), shift.reshape(1, -1)


def _bn_relu(y, scale, shift):
    rows_pad, Cpad = y.shape
    n_tiles = rows_pad // _TM
    row_spec = pl.BlockSpec((_TM, Cpad), lambda i: (i, 0))
    vec_spec = pl.BlockSpec((1, Cpad), lambda i: (0, 0))
    return pl.pallas_call(
        _bn_relu_kernel,
        out_shape=jax.ShapeDtypeStruct((rows_pad, Cpad), jnp.float32),
        grid=(n_tiles,),
        in_specs=[row_spec, vec_spec, vec_spec],
        out_specs=row_spec,
        compiler_params=_compiler_params(),
    )(y, scale, shift)


# --------------------------------------------------------------------------
# Residual forward (matches the PyTorch module in training mode)
# --------------------------------------------------------------------------
def residual_pallas(x_nchw, params, *, stride=1, use_1x1conv=False):
    N, Cin, H, W = x_nchw.shape
    Cout = params["w1"].shape[-1]
    Hout = (H - 1) // stride + 1          # k=3, pad=1
    Wout = (W - 1) // stride + 1
    NHW = N * Hout * Wout
    rows_pad = _round_up(max(NHW, _TM), _TM)
    Cpad = _round_up(Cout, _LANE)

    def pad_rows(a):
        return jnp.pad(a, ((0, rows_pad - NHW), (0, 0)))

    def pad_w(w2d):                        # zero-pad output channels to lane width
        return jnp.pad(w2d, ((0, 0), (0, Cpad - Cout))).astype(jnp.bfloat16)

    def pad_vec(v, fill=0.0):
        return jnp.pad(v.astype(jnp.float32), (0, Cpad - Cout),
                       constant_values=fill)

    x = jnp.transpose(x_nchw, (0, 2, 3, 1)).astype(jnp.float32)   # NCHW -> NHWC

    # ---- conv1 (+ fused BN1 stats), then BN1 affine + ReLU ------------------
    # Conv bias b1 omitted: BN's batch-mean subtraction cancels it exactly.
    lhs1 = pad_rows(_im2col_3x3(x, stride, Hout, Wout)).astype(jnp.bfloat16)
    w1 = pad_w(params["w1"].reshape(9 * Cin, Cout))
    y1, mean1, var1 = _conv_bn_stats(lhs1, w1, NHW)
    scale1, shift1 = _bn_scale_shift(mean1, var1,
                                     pad_vec(params["g1"], 1.0),
                                     pad_vec(params["be1"]))
    h1 = _bn_relu(y1, scale1, shift1)                             # (rows_pad, Cpad)

    # ---- conv2 (+ fused BN2 stats) ------------------------------------------
    h1_nhwc = h1[:NHW, :Cout].reshape(N, Hout, Wout, Cout)
    lhs2 = pad_rows(_im2col_3x3(h1_nhwc, 1, Hout, Wout)).astype(jnp.bfloat16)
    w2 = pad_w(params["w2"].reshape(9 * Cout, Cout))               # b2 omitted (BN cancels)
    y2, mean2, var2 = _conv_bn_stats(lhs2, w2, NHW)
    scale2, shift2 = _bn_scale_shift(mean2, var2,
                                     pad_vec(params["g2"], 1.0),
                                     pad_vec(params["be2"]))

    # ---- BN2 affine + shortcut + residual add + ReLU (one fused kernel) -----
    n_tiles = rows_pad // _TM
    row_spec = pl.BlockSpec((_TM, Cpad), lambda i: (i, 0))
    vec_spec = pl.BlockSpec((1, Cpad), lambda i: (0, 0))
    if use_1x1conv:
        # stride decimation of the shortcut input happens here, not in-kernel
        xs = pad_rows(x[:, ::stride, ::stride, :].reshape(NHW, Cin)
                      ).astype(jnp.bfloat16)
        w3 = pad_w(params["w3"].reshape(Cin, Cout))
        b3 = pad_vec(params["b3"]).reshape(1, Cpad)
        out = pl.pallas_call(
            _bn_conv1x1_add_relu_kernel,
            out_shape=jax.ShapeDtypeStruct((rows_pad, Cpad), jnp.float32),
            grid=(n_tiles,),
            in_specs=[row_spec,
                      pl.BlockSpec((_TM, Cin), lambda i: (i, 0)),
                      pl.BlockSpec((Cin, Cpad), lambda i: (0, 0)),
                      vec_spec, vec_spec, vec_spec],
            out_specs=row_spec,
            compiler_params=_compiler_params(),
        )(y2, xs, w3, b3, scale2, shift2)
    else:
        assert Cin == Cout and stride == 1, \
            "identity shortcut needs Cin==Cout and stride==1"
        xs = jnp.pad(x.reshape(NHW, Cin),
                     ((0, rows_pad - NHW), (0, Cpad - Cout)))      # f32 passthrough
        out = pl.pallas_call(
            _bn_add_relu_kernel,
            out_shape=jax.ShapeDtypeStruct((rows_pad, Cpad), jnp.float32),
            grid=(n_tiles,),
            in_specs=[row_spec, row_spec, vec_spec, vec_spec],
            out_specs=row_spec,
            compiler_params=_compiler_params(),
        )(y2, xs, scale2, shift2)

    out = out[:NHW, :Cout].reshape(N, Hout, Wout, Cout)
    return jnp.transpose(out, (0, 3, 1, 2))                        # NHWC -> NCHW


# --------------------------------------------------------------------------
# Pure-JAX gold reference (full f32, matches PyTorch training-mode forward)
# --------------------------------------------------------------------------
def residual_ref(x_nchw, params, *, stride=1, use_1x1conv=False):
    x = jnp.transpose(x_nchw, (0, 2, 3, 1)).astype(jnp.float32)

    def conv(v, w, b, s, pad):
        y = jax.lax.conv_general_dilated(
            v, w, (s, s), ((pad, pad), (pad, pad)),
            dimension_numbers=("NHWC", "HWIO", "NHWC"), precision=_HI)
        return y + b.reshape(1, 1, 1, -1)

    def bn(v, g, b):
        m = jnp.mean(v, axis=(0, 1, 2), keepdims=True)
        var = jnp.mean((v - m) ** 2, axis=(0, 1, 2), keepdims=True)
        return (g.reshape(1, 1, 1, -1) * (v - m) * jax.lax.rsqrt(var + _EPS)
                + b.reshape(1, 1, 1, -1))

    y = jax.nn.relu(bn(conv(x, params["w1"], params["b1"], stride, 1),
                       params["g1"], params["be1"]))
    y = bn(conv(y, params["w2"], params["b2"], 1, 1), params["g2"], params["be2"])
    sc = (conv(x, params["w3"], params["b3"], stride, 0) if use_1x1conv else x)
    out = jax.nn.relu(y + sc)
    return jnp.transpose(out, (0, 3, 1, 2))


def init_params(key, Cin, Cout, use_1x1conv):
    ks = jax.random.split(key, 10)
    p = {
        "w1": 0.2 * jax.random.normal(ks[0], (3, 3, Cin, Cout), jnp.float32),
        "b1": 0.1 * jax.random.normal(ks[1], (Cout,), jnp.float32),
        "w2": 0.2 * jax.random.normal(ks[2], (3, 3, Cout, Cout), jnp.float32),
        "b2": 0.1 * jax.random.normal(ks[3], (Cout,), jnp.float32),
        "g1": 1.0 + 0.1 * jax.random.normal(ks[4], (Cout,), jnp.float32),
        "be1": 0.1 * jax.random.normal(ks[5], (Cout,), jnp.float32),
        "g2": 1.0 + 0.1 * jax.random.normal(ks[6], (Cout,), jnp.float32),
        "be2": 0.1 * jax.random.normal(ks[7], (Cout,), jnp.float32),
    }
    if use_1x1conv:
        p["w3"] = 0.2 * jax.random.normal(ks[8], (1, 1, Cin, Cout), jnp.float32)
        p["b3"] = 0.1 * jax.random.normal(ks[9], (Cout,), jnp.float32)
    return p


if __name__ == "__main__":
    key = jax.random.PRNGKey(0)
    k_x, k_a, k_b = jax.random.split(key, 3)
    N, Cin, H, W = 2, 4, 16, 16
    x = jax.random.normal(k_x, (N, Cin, H, W), jnp.float32)

    fwd = jax.jit(residual_pallas, static_argnames=("stride", "use_1x1conv"))

    def check(out, ref):
        # Tolerance sized for single-pass bf16 MXU matmuls (perf review: drop
        # Precision.HIGHEST) compared against a full-f32 HIGHEST reference.
        err = jnp.abs(out - ref)
        assert float(jnp.max(err)) < 5e-2, float(jnp.max(err))
        assert float(jnp.mean(err)) < 1e-2, float(jnp.mean(err))

    # Config A: identity shortcut (in_channels == out_channels, stride=1)
    pa = init_params(k_a, Cin, Cin, use_1x1conv=False)
    out_a = jax.block_until_ready(fwd(x, pa, stride=1, use_1x1conv=False))
    ref_a = residual_ref(x, pa, stride=1, use_1x1conv=False)
    assert out_a.shape == (N, Cin, H, W)
    check(out_a, ref_a)

    # Config B: 1x1-conv shortcut, out_channels = 8, stride = 1
    Cout = 8
    pb = init_params(k_b, Cin, Cout, use_1x1conv=True)
    out_b = jax.block_until_ready(fwd(x, pb, stride=1, use_1x1conv=True))
    ref_b = residual_ref(x, pb, stride=1, use_1x1conv=True)
    assert out_b.shape == (N, Cout, H, W)
    check(out_b, ref_b)

    # Config C: 1x1-conv shortcut with stride = 2 (downsampling residual block)
    out_c = jax.block_until_ready(fwd(x, pb, stride=2, use_1x1conv=True))
    ref_c = residual_ref(x, pb, stride=2, use_1x1conv=True)
    assert out_c.shape == (N, Cout, H // 2, W // 2)
    check(out_c, ref_c)

    print("KERNEL_OK")
</pallas_src>

<mosaic_0001>
module attributes {stable_mosaic.version = 11 : i64} {
  func.func @_bn_relu_kernel(%arg0: i32, %arg1: memref<256x128xf32, #tpu.memory_space<vmem>>, %arg2: memref<1x128xf32, #tpu.memory_space<vmem>>, %arg3: memref<1x128xf32, #tpu.memory_space<vmem>>, %arg4: memref<256x128xf32, #tpu.memory_space<vmem>>) attributes {dimension_semantics = [#tpu.dimension_semantics<parallel>], iteration_bounds = array<i64: 2>, scalar_prefetch = 0 : i64, scratch_operands = 0 : i64, tpu.core_type = #tpu.core_type<tc>, window_params = [{transform_indices = @transform_0, window_bounds = array<i64: 256, 128>}, {pipeline_mode = #tpu.pipeline_mode<synchronous>, transform_indices = @transform_1, window_bounds = array<i64: 1, 128>}, {pipeline_mode = #tpu.pipeline_mode<synchronous>, transform_indices = @transform_2, window_bounds = array<i64: 1, 128>}, {transform_indices = @transform_3, window_bounds = array<i64: 256, 128>}]} {
    %c0 = arith.constant 0 : index
    %c0_0 = arith.constant 0 : index
    %0 = vector.load %arg1[%c0, %c0_0] : memref<256x128xf32, #tpu.memory_space<vmem>>, vector<256x128xf32>
    %c0_1 = arith.constant 0 : index
    %c0_2 = arith.constant 0 : index
    %1 = vector.load %arg2[%c0_1, %c0_2] : memref<1x128xf32, #tpu.memory_space<vmem>>, vector<1x128xf32>
    %2 = vector.broadcast %1 : vector<1x128xf32> to vector<256x128xf32>
    %3 = arith.mulf %0, %2 : vector<256x128xf32>
    %c0_3 = arith.constant 0 : index
    %c0_4 = arith.constant 0 : index
    %4 = vector.load %arg3[%c0_3, %c0_4] : memref<1x128xf32, #tpu.memory_space<vmem>>, vector<1x128xf32>
    %5 = vector.broadcast %4 : vector<1x128xf32> to vector<256x128xf32>
    %6 = arith.addf %3, %5 : vector<256x128xf32>
    %cst = arith.constant 0.000000e+00 : f32
    %7 = vector.broadcast %cst : f32 to vector<256x128xf32>
    %8 = arith.maximumf %6, %7 : vector<256x128xf32>
    %c0_5 = arith.constant 0 : index
    %c0_6 = arith.constant 0 : index
    %9 = vector.load %arg4[%c0_5, %c0_6] : memref<256x128xf32, #tpu.memory_space<vmem>>, vector<256x128xf32>
    tpu.vector_store %arg4[%c0_5, %c0_6], %8 {strides = array<i32>} : memref<256x128xf32, #tpu.memory_space<vmem>>, vector<256x128xf32>,
    return
  }
  func.func @transform_0(%arg0: i32) -> (i32, i32) {
    %c0_i32 = arith.constant 0 : i32
    %c0_i32_0 = arith.constant 0 : i32
    return %arg0, %c0_i32 : i32, i32
  }
  func.func @transform_1(%arg0: i32) -> (i32, i32) {
    %c0_i32 = arith.constant 0 : i32
    %c0_i32_0 = arith.constant 0 : i32
    %c0_i32_1 = arith.constant 0 : i32
    return %c0_i32, %c0_i32_0 : i32, i32
  }
  func.func @transform_2(%arg0: i32) -> (i32, i32) {
    %c0_i32 = arith.constant 0 : i32
    %c0_i32_0 = arith.constant 0 : i32
    %c0_i32_1 = arith.constant 0 : i32
    return %c0_i32, %c0_i32_0 : i32, i32
  }
  func.func @transform_3(%arg0: i32) -> (i32, i32) {
    %c0_i32 = arith.constant 0 : i32
    %c0_i32_0 = arith.constant 0 : i32
    return %arg0, %c0_i32 : i32, i32
  }
}

module attributes {stable_mosaic.version = 11 : i64} {
  func.func @_conv_stats_kernel(%arg0: i32, %arg1: memref<256x36xbf16, #tpu.memory_space<vmem>>, %arg2: memref<36x128xbf16, #tpu.memory_space<vmem>>, %arg3: memref<256x128xf32, #tpu.memory_space<vmem>>, %arg4: memref<8x128xf32, #tpu.memory_space<vmem>>) attributes {dimension_semantics = [#tpu.dimension_semantics<parallel>], iteration_bounds = array<i64: 2>, scalar_prefetch = 0 : i64, scratch_operands = 0 : i64, tpu.core_type = #tpu.core_type<tc>, window_params = [{transform_indices = @transform_0, window_bounds = array<i64: 256, 36>}, {pipeline_mode = #tpu.pipeline_mode<synchronous>, transform_indices = @transform_1, window_bounds = array<i64: 36, 128>}, {transform_indices = @transform_2, window_bounds = array<i64: 256, 128>}, {transform_indices = @transform_3, window_bounds = array<i64: 8, 128>}]} {
    %c0 = arith.constant 0 : index
    %c0_0 = arith.constant 0 : index
    %0 = vector.load %arg1[%c0, %c0_0] : memref<256x36xbf16, #tpu.memory_space<vmem>>, vector<256x36xbf16>
    %c0_1 = arith.constant 0 : index
    %c0_2 = arith.constant 0 : index
    %1 = vector.load %arg2[%c0_1, %c0_2] : memref<36x128xbf16, #tpu.memory_space<vmem>>, vector<36x128xbf16>
    %cst = arith.constant dense<0.000000e+00> : vector<256x128xf32>
    %2 = tpu.matmul %0, %1, %cst {dimension_numbers = #tpu.dot_dimension_numbers<[1], [0], [0], [1], [0, 0, 1, 1], [], []>} : vector<256x36xbf16>, vector<36x128xbf16>, vector<256x128xf32> -> vector<256x128xf32>
    %c0_3 = arith.constant 0 : index
    %c0_4 = arith.constant 0 : index
    %3 = vector.load %arg3[%c0_3, %c0_4] : memref<256x128xf32, #tpu.memory_space<vmem>>, vector<256x128xf32>
    tpu.vector_store %arg3[%c0_3, %c0_4], %2 {strides = array<i32>} : memref<256x128xf32, #tpu.memory_space<vmem>>, vector<256x128xf32>,
    %cst_5 = arith.constant dense<0.000000e+00> : vector<128xf32>
    %4 = vector.multi_reduction <add>, %2, %cst_5 [0] : vector<256x128xf32> to vector<128xf32>
    %5 = vector.shape_cast %4 : vector<128xf32> to vector<1x128xf32>
    %6 = arith.mulf %2, %2 : vector<256x128xf32>
    %cst_6 = arith.constant dense<0.000000e+00> : vector<128xf32>
    %7 = vector.multi_reduction <add>, %6, %cst_6 [0] : vector<256x128xf32> to vector<128xf32>
    %8 = vector.shape_cast %7 : vector<128xf32> to vector<1x128xf32>
    %9 = tpu.iota {dimensions = array<i32: 0>} : vector<8x128xi32>
    %c0_i32 = arith.constant 0 : i32
    %10 = vector.broadcast %c0_i32 : i32 to vector<8x128xi32>
    %11 = arith.cmpi eq, %9, %10 : vector<8x128xi32>
    %c1_i32 = arith.constant 1 : i32
    %12 = vector.broadcast %c1_i32 : i32 to vector<8x128xi32>
    %13 = arith.cmpi eq, %9, %12 : vector<8x128xi32>
    %cst_7 = arith.constant 0.000000e+00 : f32
    %14 = vector.shape_cast %8 : vector<1x128xf32> to vector<1x128xf32>
    %15 = vector.broadcast %14 : vector<1x128xf32> to vector<8x128xf32>
    %16 = vector.broadcast %cst_7 : f32 to vector<8x128xf32>
    %17 = arith.select %13, %15, %16 : vector<8x128xi1>, vector<8x128xf32>
    %18 = vector.shape_cast %5 : vector<1x128xf32> to vector<1x128xf32>
    %19 = vector.broadcast %18 : vector<1x128xf32> to vector<8x128xf32>
    %20 = arith.select %11, %19, %17 : vector<8x128xi1>, vector<8x128xf32>
    %c0_8 = arith.constant 0 : index
    %c0_9 = arith.constant 0 : index
    %21 = vector.load %arg4[%c0_8, %c0_9] : memref<8x128xf32, #tpu.memory_space<vmem>>, vector<8x128xf32>
    tpu.vector_store %arg4[%c0_8, %c0_9], %20 {strides = array<i32>} : memref<8x128xf32, #tpu.memory_space<vmem>>, vector<8x128xf32>,
    return
  }
  func.func @transform_0(%arg0: i32) -> (i32, i32) {
    %c0_i32 = arith.constant 0 : i32
    %c0_i32_0 = arith.constant 0 : i32
    return %arg0, %c0_i32 : i32, i32
  }
  func.func @transform_1(%arg0: i32) -> (i32, i32) {
    %c0_i32 = arith.constant 0 : i32
    %c0_i32_0 = arith.constant 0 : i32
    %c0_i32_1 = arith.constant 0 : i32
    return %c0_i32, %c0_i32_0 : i32, i32
  }
  func.func @transform_2(%arg0: i32) -> (i32, i32) {
    %c0_i32 = arith.constant 0 : i32
    %c0_i32_0 = arith.constant 0 : i32
    return %arg0, %c0_i32 : i32, i32
  }
  func.func @transform_3(%arg0: i32) -> (i32, i32) {
    %c0_i32 = arith.constant 0 : i32
    %c0_i32_0 = arith.constant 0 : i32
    return %arg0, %c0_i32 : i32, i32
  }
}

module attributes {stable_mosaic.version = 11 : i64} {
  func.func @_bn_add_relu_kernel(%arg0: i32, %arg1: memref<256x128xf32, #tpu.memory_space<vmem>>, %arg2: memref<256x128xf32, #tpu.memory_space<vmem>>, %arg3: memref<1x128xf32, #tpu.memory_space<vmem>>, %arg4: memref<1x128xf32, #tpu.memory_space<vmem>>, %arg5: memref<256x128xf32, #tpu.memory_space<vmem>>) attributes {dimension_semantics = [#tpu.dimension_semantics<parallel>], iteration_bounds = array<i64: 2>, scalar_prefetch = 0 : i64, scratch_operands = 0 : i64, tpu.core_type = #tpu.core_type<tc>, window_params = [{transform_indices = @transform_0, window_bounds = array<i64: 256, 128>}, {transform_indices = @transform_1, window_bounds = array<i64: 256, 128>}, {pipeline_mode = #tpu.pipeline_mode<synchronous>, transform_indices = @transform_2, window_bounds = array<i64: 1, 128>}, {pipeline_mode = #tpu.pipeline_mode<synchronous>, transform_indices = @transform_3, window_bounds = array<i64: 1, 128>}, {transform_indices = @transform_4, window_bounds = array<i64: 256, 128>}]} {
    %c0 = arith.constant 0 : index
    %c0_0 = arith.constant 0 : index
    %0 = vector.load %arg1[%c0, %c0_0] : memref<256x128xf32, #tpu.memory_space<vmem>>, vector<256x128xf32>
    %c0_1 = arith.constant 0 : index
    %c0_2 = arith.constant 0 : index
    %1 = vector.load %arg3[%c0_1, %c0_2] : memref<1x128xf32, #tpu.memory_space<vmem>>, vector<1x128xf32>
    %2 = vector.broadcast %1 : vector<1x128xf32> to vector<256x128xf32>
    %3 = arith.mulf %0, %2 : vector<256x128xf32>
    %c0_3 = arith.constant 0 : index
    %c0_4 = arith.constant 0 : index
    %4 = vector.load %arg4[%c0_3, %c0_4] : memref<1x128xf32, #tpu.memory_space<vmem>>, vector<1x128xf32>
    %5 = vector.broadcast %4 : vector<1x128xf32> to vector<256x128xf32>
    %6 = arith.addf %3, %5 : vector<256x128xf32>
    %c0_5 = arith.constant 0 : index
    %c0_6 = arith.constant 0 : index
    %7 = vector.load %arg2[%c0_5, %c0_6] : memref<256x128xf32, #tpu.memory_space<vmem>>, vector<256x128xf32>
    %8 = arith.addf %6, %7 : vector<256x128xf32>
    %cst = arith.constant 0.000000e+00 : f32
    %9 = vector.broadcast %cst : f32 to vector<256x128xf32>
    %10 = arith.maximumf %8, %9 : vector<256x128xf32>
    %c0_7 = arith.constant 0 : index
    %c0_8 = arith.constant 0 : index
    %11 = vector.load %arg5[%c0_7, %c0_8] : memref<256x128xf32, #tpu.memory_space<vmem>>, vector<256x128xf32>
    tpu.vector_store %arg5[%c0_7, %c0_8], %10 {strides = array<i32>} : memref<256x128xf32, #tpu.memory_space<vmem>>, vector<256x128xf32>,
    return
  }
  func.func @transform_0(%arg0: i32) -> (i32, i32) {
    %c0_i32 = arith.constant 0 : i32
    %c0_i32_0 = arith.constant 0 : i32
    return %arg0, %c0_i32 : i32, i32
  }
  func.func @transform_1(%arg0: i32) -> (i32, i32) {
    %c0_i32 = arith.constant 0 : i32
    %c0_i32_0 = arith.constant 0 : i32
    return %arg0, %c0_i32 : i32, i32
  }
  func.func @transform_2(%arg0: i32) -> (i32, i32) {
    %c0_i32 = arith.constant 0 : i32
    %c0_i32_0 = arith.constant 0 : i32
    %c0_i32_1 = arith.constant 0 : i32
    return %c0_i32, %c0_i32_0 : i32, i32
  }
  func.func @transform_3(%arg0: i32) -> (i32, i32) {
    %c0_i32 = arith.constant 0 : i32
    %c0_i32_0 = arith.constant 0 : i32
    %c0_i32_1 = arith.constant 0 : i32
    return %c0_i32, %c0_i32_0 : i32, i32
  }
  func.func @transform_4(%arg0: i32) -> (i32, i32) {
    %c0_i32 = arith.constant 0 : i32
    %c0_i32_0 = arith.constant 0 : i32
    return %arg0, %c0_i32 : i32, i32
  }
}

</mosaic_0001>

<bundles_post_ra>
// kernel: residual_pallas.5
= control target key start
LH: loop header
LB: loop body
LE: loop exit
PB: predicated region body
PF: predicated region fallthrough
CT: control target
= control target key end

     0   :  { %s453_s12 = smov 0   ;;  %s612_s0 = inlined_call_operand.vmem [shape: f32[512,128], index: 0, kind: input, shape index: {}]   ;;  %s613_s1 = inlined_call_operand.vmem [shape: f32[1,128], index: 1, kind: input, shape index: {}]   ;;  %s614_s2 = inlined_call_operand.vmem [shape: f32[1,128], index: 2, kind: input, shape index: {}]   ;;  %s615_s3 = inlined_call_operand.vmem [shape: f32[512,128], index: 3, kind: output, shape index: {}]  }
   0x1 LB: > { %s404_s13 = sadd.s32 4294967295, %s431_s12   ;;  %p408_p0 = scmp.ge.s32.totalorder %s431_s12, 1  ;;  %s431_s12 = sphi %s453_s12, %s13_s12  }
   0x2   : > { %p138_p1 = scmp.lt.s32.totalorder %s431_s12, 3 }
   0x4   : > { %p139_p2 = pnand %p408_p0, %p138_p1 }
   0x5   : > { %s409_s14 = sshll.u32 (!%p139_p2), %s404_s13, 5 }
   0x6   : > { %142 = sbr.rel (%p139_p2) target bundleno = 44 (0x2c), region = 32  ;;  %p163_p3 = scmp.lt.s32.totalorder (!%p139_p2), %s409_s14, 63 }
   0xb   : > { %s617_s14 = smov (!%p163_p3, %s409_s14), 63  ;;  %v464_v0 = vld [vmem:[%s613_s1] ss:$0 sm:$0xff] }
   0xc   : > { %s410_s15 = sshll.u32 %s617_s14, 3  ;;  %v474_v1 = vld [vmem:[%s614_s2] ss:$0 sm:$0xff] }
   0xd   : > { %s469_s20 = scalar_lea.vmem %s612_s0, %s410_s15  ;;  %s497_s25 = scalar_lea.vmem %s615_s3, %s410_s15 }
   0xe   : > { %v174_v2 = vld [vmem:[%s469_s20] sm:$0xff]  ;;  %v175_v3 = vld [vmem:[%s469_s20 + $0x8] sm:$0xff]  ;;  %v176_v4 = vld [vmem:[%s469_s20 + $0x10] sm:$0xff] }
   0xf   : > { %v213_v5 = vmul.f32 %v464_v0, %v174_v2  ;;  %v214_v6 = vmul.f32 %v464_v0, %v175_v3  ;;  %v215_v7 = vmul.f32 %v464_v0, %v176_v4  ;;  %v177_v8 = vld [vmem:[%s469_s20 + $0x18] sm:$0xff]  ;;  %v178_v9 = vld [vmem:[%s469_s20 + $0x20] sm:$0xff]  ;;  %v179_v10 = vld [vmem:[%s469_s20 + $0x28] sm:$0xff] }
  0x10   : > { %v216_v11 = vmul.f32 %v464_v0, %v177_v8  ;;  %v217_v12 = vmul.f32 %v464_v0, %v178_v9  ;;  %v218_v13 = vmul.f32 %v464_v0, %v179_v10  ;;  %v180_v14 = vld [vmem:[%s469_s20 + $0x30] sm:$0xff]  ;;  %v181_v15 = vld [vmem:[%s469_s20 + $0x38] sm:$0xff]  ;;  %v182_v24 = vld [vmem:[%s469_s20 + $0x40] sm:$0xff] }
  0x11   : > { %v252_v16 = vadd.f32 %v474_v1, %v213_v5  ;;  %v253_v17 = vadd.f32 %v474_v1, %v214_v6  ;;  %v254_v18 = vadd.f32 %v474_v1, %v215_v7  ;;  %v219_v19 = vmul.f32 %v464_v0, %v180_v14  ;;  %v183_v25 = vld [vmem:[%s469_s20 + $0x48] sm:$0xff]  ;;  %v184_v26 = vld [vmem:[%s469_s20 + $0x50] sm:$0xff]  ;;  %v185_v31 = vld [vmem:[%s469_s20 + $0x58] sm:$0xff] }
  0x12   : > { %v255_v20 = vadd.f32 %v474_v1, %v216_v11  ;;  %v256_v21 = vadd.f32 %v474_v1, %v217_v12  ;;  %v257_v22 = vadd.f32 %v474_v1, %v218_v13  ;;  %v220_v23 = vmul.f32 %v464_v0, %v181_v15  ;;  %v186_v32 = vld [vmem:[%s469_s20 + $0x60] sm:$0xff]  ;;  %v187_v33 = vld [vmem:[%s469_s20 + $0x68] sm:$0xff]  ;;  %v188_v38 = vld [vmem:[%s469_s20 + $0x70] sm:$0xff] }
  0x13   : > { %v284_v27 = vmax.f32 %v252_v16, 0.0  ;;  %v285_v28 = vmax.f32 %v253_v17, 0.0  ;;  %v286_v29 = vmax.f32 %v254_v18, 0.0  ;;  %v258_v30 = vadd.f32 %v474_v1, %v219_v19  ;;  %v189_v43 = vld [vmem:[%s469_s20 + $0x78] sm:$0xff]  ;;  %v190_v56 = vld [vmem:[%s469_s20 + $0x80] sm:$0xff]  ;;  %v191_v57 = vld [vmem:[%s469_s20 + $0x88] sm:$0xff] }
  0x14   : > { %v287_v34 = vmax.f32 %v255_v20, 0.0  ;;  %v288_v35 = vmax.f32 %v256_v21, 0.0  ;;  %v289_v36 = vmax.f32 %v257_v22, 0.0  ;;  %v259_v37 = vadd.f32 %v474_v1, %v220_v23  ;;  %v192_v58 = vld [vmem:[%s469_s20 + $0x90] sm:$0xff]  ;;  %v193_v63 = vld [vmem:[%s469_s20 + $0x98] sm:$0xff]  ;;  %v194_v2 = vld [vmem:[%s469_s20 + $0xa0] sm:$0xff] }
  0x15   : > { %316 = vst [vmem:[%s497_s25] sm:$0xff] %v284_v27  ;;  %317 = vst [vmem:[%s497_s25 + $0x8] sm:$0xff] %v285_v28  ;;  %v290_v39 = vmax.f32 %v258_v30, 0.0  ;;  %v221_v40 = vmul.f32 %v464_v0, %v182_v24  ;;  %v222_v41 = vmul.f32 %v464_v0, %v183_v25  ;;  %v223_v42 = vmul.f32 %v464_v0, %v184_v26  ;;  %v195_v3 = vld [vmem:[%s469_s20 + $0xa8] sm:$0xff]  ;;  %v196_v8 = vld [vmem:[%s469_s20 + $0xb0] sm:$0xff] }
  0x16   : > { %318 = vst [vmem:[%s497_s25 + $0x10] sm:$0xff] %v286_v29  ;;  %319 = vst [vmem:[%s497_s25 + $0x18] sm:$0xff] %v287_v34  ;;  %v291_v44 = vmax.f32 %v259_v37, 0.0  ;;  %v224_v45 = vmul.f32 %v464_v0, %v185_v31  ;;  %v225_v46 = vmul.f32 %v464_v0, %v186_v32  ;;  %v226_v47 = vmul.f32 %v464_v0, %v187_v33  ;;  %v197_v13 = vld [vmem:[%s469_s20 + $0xb8] sm:$0xff]  ;;  %v198_v26 = vld [vmem:[%s469_s20 + $0xc0] sm:$0xff] }
  0x17   : > { %320 = vst [vmem:[%s497_s25 + $0x20] sm:$0xff] %v288_v35  ;;  %321 = vst [vmem:[%s497_s25 + $0x28] sm:$0xff] %v289_v36  ;;  %v260_v48 = vadd.f32 %v474_v1, %v221_v40  ;;  %v261_v49 = vadd.f32 %v474_v1, %v222_v41  ;;  %v262_v50 = vadd.f32 %v474_v1, %v223_v42  ;;  %v199_v27 = vld [vmem:[%s469_s20 + $0xc8] sm:$0xff]  ;;  %v200_v28 = vld [vmem:[%s469_s20 + $0xd0] sm:$0xff] }
  0x18   : > { %322 = vst [vmem:[%s497_s25 + $0x30] sm:$0xff] %v290_v39  ;;  %v227_v51 = vmul.f32 %v464_v0, %v188_v38  ;;  %323 = vst [vmem:[%s497_s25 + $0x38] sm:$0xff] %v291_v44  ;;  %v263_v52 = vadd.f32 %v474_v1, %v224_v45  ;;  %v264_v53 = vadd.f32 %v474_v1, %v225_v46  ;;  %v201_v33 = vld [vmem:[%s469_s20 + $0xd8] sm:$0xff]  ;;  %v202_v34 = vld [vmem:[%s469_s20 + $0xe0] sm:$0xff] }
  0x19   : > { %v265_v54 = vadd.f32 %v474_v1, %v226_v47  ;;  %v228_v55 = vmul.f32 %v464_v0, %v189_v43  ;;  %v292_v59 = vmax.f32 %v260_v48, 0.0  ;;  %v293_v60 = vmax.f32 %v261_v49, 0.0  ;;  %v203_v35 = vld [vmem:[%s469_s20 + $0xe8] sm:$0xff]  ;;  %v204_v40 = vld [vmem:[%s469_s20 + $0xf0] sm:$0xff]  ;;  %v205_v45 = vld [vmem:[%s469_s20 + $0xf8] sm:$0xff] }
  0x1a   : > { %v294_v61 = vmax.f32 %v262_v50, 0.0  ;;  %v266_v62 = vadd.f32 %v474_v1, %v227_v51  ;;  %v295_v4 = vmax.f32 %v263_v52, 0.0  ;;  %v296_v5 = vmax.f32 %v264_v53, 0.0 }
  0x1b   : > { %v297_v6 = vmax.f32 %v265_v54, 0.0  ;;  %v267_v7 = vadd.f32 %v474_v1, %v228_v55  ;;  %324 = vst [vmem:[%s497_s25 + $0x40] sm:$0xff] %v292_v59  ;;  %325 = vst [vmem:[%s497_s25 + $0x48] sm:$0xff] %v293_v60  ;;  %v229_v10 = vmul.f32 %v464_v0, %v190_v56  ;;  %v230_v11 = vmul.f32 %v464_v0, %v191_v57 }
  0x1c   : > { %326 = vst [vmem:[%s497_s25 + $0x50] sm:$0xff] %v294_v61  ;;  %v298_v9 = vmax.f32 %v266_v62, 0.0  ;;  %v231_v12 = vmul.f32 %v464_v0, %v192_v58  ;;  %327 = vst [vmem:[%s497_s25 + $0x58] sm:$0xff] %v295_v4  ;;  %v232_v15 = vmul.f32 %v464_v0, %v193_v63  ;;  %v233_v16 = vmul.f32 %v464_v0, %v194_v2 }
  0x1d   : > { %328 = vst [vmem:[%s497_s25 + $0x60] sm:$0xff] %v296_v5  ;;  %329 = vst [vmem:[%s497_s25 + $0x68] sm:$0xff] %v297_v6  ;;  %v299_v14 = vmax.f32 %v267_v7, 0.0  ;;  %v234_v17 = vmul.f32 %v464_v0, %v195_v3  ;;  %v268_v18 = vadd.f32 %v474_v1, %v229_v10  ;;  %v269_v19 = vadd.f32 %v474_v1, %v230_v11 }
  0x1e   : > { %330 = vst [vmem:[%s497_s25 + $0x70] sm:$0xff] %v298_v9  ;;  %v270_v20 = vadd.f32 %v474_v1, %v231_v12  ;;  %v235_v21 = vmul.f32 %v464_v0, %v196_v8  ;;  %v271_v22 = vadd.f32 %v474_v1, %v232_v15  ;;  %v272_v23 = vadd.f32 %v474_v1, %v233_v16 }
  0x1f   : > { %331 = vst [vmem:[%s497_s25 + $0x78] sm:$0xff] %v299_v14  ;;  %v273_v24 = vadd.f32 %v474_v1, %v234_v17  ;;  %v236_v25 = vmul.f32 %v464_v0, %v197_v13  ;;  %v300_v29 = vmax.f32 %v268_v18, 0.0  ;;  %v301_v30 = vmax.f32 %v269_v19, 0.0 }
  0x20   : > { %v302_v31 = vmax.f32 %v270_v20, 0.0  ;;  %v274_v32 = vadd.f32 %v474_v1, %v235_v21  ;;  %v303_v36 = vmax.f32 %v271_v22, 0.0  ;;  %v304_v37 = vmax.f32 %v272_v23, 0.0 }
  0x21   : > { %v305_v38 = vmax.f32 %v273_v24, 0.0  ;;  %v275_v39 = vadd.f32 %v474_v1, %v236_v25  ;;  %332 = vst [vmem:[%s497_s25 + $0x80] sm:$0xff] %v300_v29  ;;  %333 = vst [vmem:[%s497_s25 + $0x88] sm:$0xff] %v301_v30  ;;  %v237_v42 = vmul.f32 %v464_v0, %v198_v26  ;;  %v238_v43 = vmul.f32 %v464_v0, %v199_v27 }
  0x22   : > { %334 = vst [vmem:[%s497_s25 + $0x90] sm:$0xff] %v302_v31  ;;  %v306_v41 = vmax.f32 %v274_v32, 0.0  ;;  %v239_v44 = vmul.f32 %v464_v0, %v200_v28  ;;  %335 = vst [vmem:[%s497_s25 + $0x98] sm:$0xff] %v303_v36  ;;  %v240_v47 = vmul.f32 %v464_v0, %v201_v33  ;;  %v241_v48 = vmul.f32 %v464_v0, %v202_v34 }
  0x23   : > { %336 = vst [vmem:[%s497_s25 + $0xa0] sm:$0xff] %v304_v37  ;;  %337 = vst [vmem:[%s497_s25 + $0xa8] sm:$0xff] %v305_v38  ;;  %v307_v46 = vmax.f32 %v275_v39, 0.0  ;;  %v242_v49 = vmul.f32 %v464_v0, %v203_v35  ;;  %v276_v50 = vadd.f32 %v474_v1, %v237_v42  ;;  %v277_v51 = vadd.f32 %v474_v1, %v238_v43 }
  0x24   : > { %338 = vst [vmem:[%s497_s25 + $0xb0] sm:$0xff] %v306_v41  ;;  %v278_v52 = vadd.f32 %v474_v1, %v239_v44  ;;  %v243_v53 = vmul.f32 %v464_v0, %v204_v40  ;;  %v279_v54 = vadd.f32 %v474_v1, %v240_v47  ;;  %v280_v55 = vadd.f32 %v474_v1, %v241_v48 }
  0x25   : > { %339 = vst [vmem:[%s497_s25 + $0xb8] sm:$0xff] %v307_v46  ;;  %v281_v56 = vadd.f32 %v474_v1, %v242_v49  ;;  %v244_v57 = vmul.f32 %v464_v0, %v205_v45  ;;  %v308_v58 = vmax.f32 %v276_v50, 0.0  ;;  %v309_v59 = vmax.f32 %v277_v51, 0.0 }
  0x26   : > { %v310_v60 = vmax.f32 %v278_v52, 0.0  ;;  %v282_v61 = vadd.f32 %v474_v1, %v243_v53  ;;  %v311_v62 = vmax.f32 %v279_v54, 0.0  ;;  %v312_v63 = vmax.f32 %v280_v55, 0.0 }
  0x27   : > { %v313_v2 = vmax.f32 %v281_v56, 0.0  ;;  %v283_v3 = vadd.f32 %v474_v1, %v244_v57  ;;  %340 = vst [vmem:[%s497_s25 + $0xc0] sm:$0xff] %v308_v58  ;;  %341 = vst [vmem:[%s497_s25 + $0xc8] sm:$0xff] %v309_v59 }
  0x28   : > { %342 = vst [vmem:[%s497_s25 + $0xd0] sm:$0xff] %v310_v60  ;;  %v314_v4 = vmax.f32 %v282_v61, 0.0  ;;  %343 = vst [vmem:[%s497_s25 + $0xd8] sm:$0xff] %v311_v62 }
  0x29   : > { %344 = vst [vmem:[%s497_s25 + $0xe0] sm:$0xff] %v312_v63  ;;  %345 = vst [vmem:[%s497_s25 + $0xe8] sm:$0xff] %v313_v2  ;;  %v315_v0 = vmax.f32 %v283_v3, 0.0 }
  0x2a   : > { %346 = vst [vmem:[%s497_s25 + $0xf0] sm:$0xff] %v314_v4 }
  0x2b   : > { %347 = vst [vmem:[%s497_s25 + $0xf8] sm:$0xff] %v315_v0 }
  0x2c PF: > { %s13_s12 = sadd.s32 1, %s431_s12  }
  0x2d   : > { %p10_p4 = scmp.ge.s32.totalorder %s13_s12, 4  }
  0x2f   :  { %12 = sbr.rel (!%p10_p4) target bundleno = 1 (0x1), region = 62 }

// kernel: residual_pallas.4
= control target key start
LH: loop header
LB: loop body
LE: loop exit
PB: predicated region body
PF: predicated region fallthrough
CT: control target
= control target key end

     0   :  { %s931_s12 = smov 0   ;;  %s1103_s0 = inlined_call_operand.vmem [shape: bf16[512,36], index: 0, kind: input, shape index: {}]   ;;  %s1104_s1 = inlined_call_operand.vmem [shape: bf16[36,128], index: 1, kind: input, shape index: {}]   ;;  %s1105_s2 = inlined_call_operand.vmem [shape: f32[512,128], index: 2, kind: output, shape index: {0}]   ;;  %s1106_s3 = inlined_call_operand.vmem [shape: f32[16,128], index: 3, kind: output, shape index: {1}]  }
   0x1 LB: > { %s937_s13 = sadd.s32 4294967295, %s909_s12   ;;  %p768_p0 = scmp.ge.s32.totalorder %s909_s12, 1  ;;  %s909_s12 = sphi %s931_s12, %s14_s12  }
   0x2   : > { %p141_p1 = scmp.lt.s32.totalorder %s909_s12, 3 }
   0x4   : > { %p142_p2 = pnand %p768_p0, %p141_p1 }
   0x5   : > { %s769_s18 = sshll.u32 (!%p142_p2), %s937_s13, 5  ;;  %p181_p4 = scmp.lt.s32.totalorder (!%p142_p2), %s937_s13, 1 }
   0x6   : > { %145 = sbr.rel (%p142_p2) target bundleno = 302 (0x12e), region = 28  ;;  %p170_p3 = scmp.lt.s32.totalorder (!%p142_p2), %s769_s18, 63 }
   0xb   : > { %v884_v0 = vld [vmem:[%s1104_s1 + $0x10] ss:$0 sps:$4 sm:$0x33]   ;;  %vm367_vm0 = vcmask 1041408   ;;  %v885_v1 = vld [vmem:[%s1104_s1 + $0x8] sm:$0xff]   ;;  %v886_v3 = vld [vmem:[%s1104_s1] sm:$0xff]  }
   0xc   : > { %874 = vmatprep.subr.msk.bf16.mxu0 %vm367_vm0, %v884_v0  ;;  %v369_v2 = vsel %vm367_vm0, %v884_v0, 0  ;;  %875 = vmatprep.subr.msk.bf16.mxu1 %vm367_vm0, %v884_v0  ;;  %s1108_s18 = smov (!%p170_p3, %s769_s18), 63  ;;  %vm318_vm1 = vcmask 293888   ;;  %s1110_s13 = smov (!%p181_p4, %s937_s13), 1 }
   0xd   : > { %831 = vmatpush3.bf16.msra.mxu0 %v369_v2  ;;  %871 = vmatpush3.bf16.msra.mxu1 %v369_v2  ;;  %s770_s21 = sshll.u32 %s1108_s18, 2  ;;  %s772_s25 = sshll.u32 %s1108_s18, 3 }
   0xe   : > { %832 = vmatprep.subr.bf16.mxu0 %v885_v1  ;;  %869 = vmatprep.subr.bf16.mxu1 %v885_v1  ;;  %s957_s24 = scalar_lea.vmem %s1103_s0, %s770_s21  ;;  %s995_s28 = scalar_lea.vmem %s1105_s2, %s772_s25 }
   0xf   : > { %v887_v4 = vld [vmem:[%s957_s24] sm:$0xff]   ;;  %v888_v5 = vld [vmem:[%s957_s24 + $0x8] sm:$0xff]   ;;  %v889_v6 = vld [vmem:[%s957_s24 + $0x10] sm:$0xff]   ;;  %s773_s29 = sshll.u32 %s1110_s13, 3 }
  0x10   : > { %836 = vmatprep.mubr.msk.bf16.mxu0 %vm318_vm1, %v887_v4  ;;  %v890_v7 = vld [vmem:[%s957_s24 + $0x18] sm:$0xff]   ;;  %v891_v8 = vld [vmem:[%s957_s24 + $0x20] sm:$0xff]   ;;  %v896_v10 = vld [vmem:[%s957_s24 + $0x48] sm:$0xff]   ;;  %s184_s5 = scalar_lea.vmem %s1106_s3, %s773_s29 }
  0x11   : > { %833 = vmatpush3.bf16.msra.mxu0 %v885_v1  ;;  %872 = vmatpush3.bf16.msra.mxu1 %v885_v1  ;;  %v895_v9 = vld [vmem:[%s957_s24 + $0x40] sm:$0xff]   ;;  %v897_v11 = vld [vmem:[%s957_s24 + $0x50] sm:$0xff]   ;;  %v898_v12 = vld [vmem:[%s957_s24 + $0x58] sm:$0xff]  }
  0x12   : > { %834 = vmatprep.subr.bf16.mxu0 %v886_v3  ;;  %870 = vmatprep.subr.bf16.mxu1 %v886_v3  ;;  %v899_v13 = vld [vmem:[%s957_s24 + $0x60] sm:$0xff]   ;;  %v892_v14 = vld [vmem:[%s957_s24 + $0x28] sm:$0xff]   ;;  %v893_v15 = vld [vmem:[%s957_s24 + $0x30] sm:$0xff]  }
  0x13   : > { %852 = vmatprep.mubr.msk.bf16.mxu1 %vm318_vm1, %v895_v9  ;;  %v900_v16 = vld [vmem:[%s957_s24 + $0x68] sm:$0xff]   ;;  %v901_v17 = vld [vmem:[%s957_s24 + $0x70] sm:$0xff]   ;;  %v894_v18 = vld [vmem:[%s957_s24 + $0x38] sm:$0xff]  }
  0x14   : > { %v902_v19 = vld [vmem:[%s957_s24 + $0x78] sm:$0xff]  }
  0x15   : > { %835 = vmatpush3.bf16.msra.mxu0 %v886_v3  ;;  %873 = vmatpush3.bf16.msra.mxu1 %v886_v3 }
  0x18   : > { %837 = vmatmul.mubr.msk.bf16.vlgmr.msra.gmra.mxu0 %vm318_vm1, %v888_v5  ;;  %853 = vmatmul.mubr.msk.bf16.vlgmr.msra.gmra.mxu1 %vm318_vm1, %v896_v10 }
  0x19   : > { %840 = vmatprep.mubr.msk.bf16.mxu0 %vm318_vm1, %v889_v6  ;;  %856 = vmatprep.mubr.msk.bf16.mxu1 %vm318_vm1, %v897_v11 }
  0x20   : > { %841 = vmatmul.mubr.msk.bf16.gmra.mxu0 %vm318_vm1, %v890_v7  ;;  %857 = vmatmul.mubr.msk.bf16.gmra.mxu1 %vm318_vm1, %v898_v12 }
  0x21   : > { %844 = vmatprep.mubr.msk.bf16.mxu0 %vm318_vm1, %v891_v8  ;;  %860 = vmatprep.mubr.msk.bf16.mxu1 %vm318_vm1, %v899_v13 }
  0x28   : > { %845 = vmatmul.mubr.msk.bf16.gmra.mxu0 %vm318_vm1, %v892_v14  ;;  %861 = vmatmul.mubr.msk.bf16.gmra.mxu1 %vm318_vm1, %v900_v16 }
  0x29   : > { %848 = vmatprep.mubr.msk.bf16.mxu0 %vm318_vm1, %v893_v15  ;;  %864 = vmatprep.mubr.msk.bf16.mxu1 %vm318_vm1, %v901_v17 }
  0x30   : > { %849 = vmatmul.mubr.msk.bf16.gmra.mxu0 %vm318_vm1, %v894_v18  ;;  %865 = vmatmul.mubr.msk.bf16.gmra.mxu1 %vm318_vm1, %v902_v19 }
  0xd8   : > { %v838_v20 = vpop.f32.mrf.mxu0  ;;  %v1000_v24 = vpop.f32.mrf.mxu1 }
  0xd9   : > { %534 = vst [vmem:[%s995_s28 + $0x10] sm:$0xff] %v838_v20  ;;  %550 = vst [vmem:[%s995_s28 + $0x90] sm:$0xff] %v1000_v24  ;;  %v603_v30 = vmul.f32 %v838_v20, %v838_v20 }
  0xda   : > { %v405_v21 = vpop.f32.mrf.mxu0  ;;  %v1005_v29 = vpop.f32.mrf.mxu1 }
  0xdb   : > { %532 = vst [vmem:[%s995_s28] sm:$0xff] %v405_v21  ;;  %v601_v25 = vmul.f32 %v405_v21, %v405_v21  ;;  %548 = vst [vmem:[%s995_s28 + $0x80] sm:$0xff] %v1005_v29 }
  0xdc   : > { %v839_v22 = vpop.f32.mrf.mxu0  ;;  %v1010_v34 = vpop.f32.mrf.mxu1 }
  0xdd   : > { %535 = vst [vmem:[%s995_s28 + $0x18] sm:$0xff] %v839_v22  ;;  %v604_v35 = vmul.f32 %v839_v22, %v839_v22  ;;  %551 = vst [vmem:[%s995_s28 + $0x98] sm:$0xff] %v1010_v34 }
  0xde   : > { %v408_v23 = vpop.f32.mrf.mxu0  ;;  %v1015_v39 = vpop.f32.mrf.mxu1 }
  0xdf   : > { %533 = vst [vmem:[%s995_s28 + $0x8] sm:$0xff] %v408_v23  ;;  %v564_v26 = vadd.f32 %v408_v23, %v405_v21  ;;  %v602_v27 = vmul.f32 %v408_v23, %v408_v23  ;;  %549 = vst [vmem:[%s995_s28 + $0x88] sm:$0xff] %v1015_v39 }
  0xe0   : > { %v842_v28 = vpop.f32.mrf.mxu0  ;;  %v1020_v44 = vpop.f32.mrf.mxu1 }
  0xe1   : > { %v565_v31 = vadd.f32 %v838_v20, %v564_v26  ;;  %v633_v32 = vadd.f32 %v602_v27, %v601_v25  ;;  %538 = vst [vmem:[%s995_s28 + $0x30] sm:$0xff] %v842_v28  ;;  %554 = vst [vmem:[%s995_s28 + $0xb0] sm:$0xff] %v1020_v44  ;;  %v607_v50 = vmul.f32 %v842_v28, %v842_v28 }
  0xe2   : > { %v421_v33 = vpop.f32.mrf.mxu0  ;;  %v1025_v49 = vpop.f32.mrf.mxu1 }
  0xe3   : > { %v634_v36 = vadd.f32 %v633_v32, %v603_v30  ;;  %536 = vst [vmem:[%s995_s28 + $0x20] sm:$0xff] %v421_v33  ;;  %v566_v37 = vadd.f32 %v839_v22, %v565_v31  ;;  %v605_v41 = vmul.f32 %v421_v33, %v421_v33  ;;  %552 = vst [vmem:[%s995_s28 + $0xa0] sm:$0xff] %v1025_v49 }
  0xe4   : > { %v843_v38 = vpop.f32.mrf.mxu0  ;;  %v1030_v54 = vpop.f32.mrf.mxu1 }
  0xe5   : > { %v567_v40 = vadd.f32 %v566_v37, %v421_v33  ;;  %v635_v42 = vadd.f32 %v634_v36, %v604_v35  ;;  %539 = vst [vmem:[%s995_s28 + $0x38] sm:$0xff] %v843_v38  ;;  %v608_v55 = vmul.f32 %v843_v38, %v843_v38  ;;  %555 = vst [vmem:[%s995_s28 + $0xb8] sm:$0xff] %v1030_v54 }
  0xe6   : > { %v424_v43 = vpop.f32.mrf.mxu0  ;;  %v1035_v59 = vpop.f32.mrf.mxu1  ;;  %v617_v36 = vmul.f32 %v1005_v29, %v1005_v29 }
  0xe7   : > { %v636_v45 = vadd.f32 %v635_v42, %v605_v41  ;;  %537 = vst [vmem:[%s995_s28 + $0x28] sm:$0xff] %v424_v43  ;;  %v568_v46 = vadd.f32 %v567_v40, %v424_v43  ;;  %v606_v47 = vmul.f32 %v424_v43, %v424_v43  ;;  %553 = vst [vmem:[%s995_s28 + $0xa8] sm:$0xff] %v1035_v59 }
  0xe8   : > { %v846_v48 = vpop.f32.mrf.mxu0  ;;  %v1040_v0 = vpop.f32.mrf.mxu1  ;;  %v618_v41 = vmul.f32 %v1015_v39, %v1015_v39  ;;  %v619_v43 = vmul.f32 %v1000_v24, %v1000_v24 }
  0xe9   : > { %v569_v51 = vadd.f32 %v842_v28, %v568_v46  ;;  %v637_v52 = vadd.f32 %v636_v45, %v606_v47  ;;  %542 = vst [vmem:[%s995_s28 + $0x50] sm:$0xff] %v846_v48  ;;  %558 = vst [vmem:[%s995_s28 + $0xd0] sm:$0xff] %v1040_v0  ;;  %v611_v6 = vmul.f32 %v846_v48, %v846_v48 }
  0xea   : > { %v437_v53 = vpop.f32.mrf.mxu0  ;;  %v1045_v5 = vpop.f32.mrf.mxu1  ;;  %v620_v47 = vmul.f32 %v1010_v34, %v1010_v34 }
  0xeb   : > { %v638_v56 = vadd.f32 %v637_v52, %v607_v50  ;;  %540 = vst [vmem:[%s995_s28 + $0x40] sm:$0xff] %v437_v53  ;;  %v570_v57 = vadd.f32 %v843_v38, %v569_v51  ;;  %v609_v61 = vmul.f32 %v437_v53, %v437_v53  ;;  %556 = vst [vmem:[%s995_s28 + $0xc0] sm:$0xff] %v1045_v5 }
  0xec   : > { %v847_v58 = vpop.f32.mrf.mxu0  ;;  %v1050_v10 = vpop.f32.mrf.mxu1  ;;  %v621_v51 = vmul.f32 %v1025_v49, %v1025_v49 }
  0xed   : > { %v571_v60 = vadd.f32 %v570_v57, %v437_v53  ;;  %v639_v62 = vadd.f32 %v638_v56, %v608_v55  ;;  %543 = vst [vmem:[%s995_s28 + $0x58] sm:$0xff] %v847_v58  ;;  %v612_v11 = vmul.f32 %v847_v58, %v847_v58  ;;  %559 = vst [vmem:[%s995_s28 + $0xd8] sm:$0xff] %v1050_v10 }
  0xee   : > { %v440_v63 = vpop.f32.mrf.mxu0  ;;  %v504_v15 = vpop.f32.mrf.mxu1  ;;  %v622_v55 = vmul.f32 %v1035_v59, %v1035_v59 }
  0xef   : > { %v640_v1 = vadd.f32 %v639_v62, %v609_v61  ;;  %541 = vst [vmem:[%s995_s28 + $0x48] sm:$0xff] %v440_v63  ;;  %v572_v2 = vadd.f32 %v571_v60, %v440_v63  ;;  %v610_v3 = vmul.f32 %v440_v63, %v440_v63  ;;  %557 = vst [vmem:[%s995_s28 + $0xc8] sm:$0xff] %v504_v15 }
  0xf0   : > { %v850_v4 = vpop.f32.mrf.mxu0  ;;  %v866_v20 = vpop.f32.mrf.mxu1  ;;  %v625_v61 = vmul.f32 %v1045_v5, %v1045_v5 }
  0xf1   : > { %v573_v7 = vadd.f32 %v846_v48, %v572_v2  ;;  %v641_v8 = vadd.f32 %v640_v1, %v610_v3  ;;  %546 = vst [vmem:[%s995_s28 + $0x70] sm:$0xff] %v850_v4  ;;  %562 = vst [vmem:[%s995_s28 + $0xf0] sm:$0xff] %v866_v20  ;;  %v615_v26 = vmul.f32 %v850_v4, %v850_v4 }
  0xf2   : > { %v453_v9 = vpop.f32.mrf.mxu0  ;;  %v517_v25 = vpop.f32.mrf.mxu1  ;;  %v626_v1 = vmul.f32 %v504_v15, %v504_v15  ;;  %v627_v2 = vmul.f32 %v1040_v0, %v1040_v0 }
  0xf3   : > { %v642_v12 = vadd.f32 %v641_v8, %v611_v6  ;;  %544 = vst [vmem:[%s995_s28 + $0x60] sm:$0xff] %v453_v9  ;;  %v574_v13 = vadd.f32 %v847_v58, %v573_v7  ;;  %v613_v17 = vmul.f32 %v453_v9, %v453_v9  ;;  %560 = vst [vmem:[%s995_s28 + $0xe0] sm:$0xff] %v517_v25 }
  0xf4   : > { %v851_v14 = vpop.f32.mrf.mxu0  ;;  %v867_v30 = vpop.f32.mrf.mxu1  ;;  %v629_v8 = vmul.f32 %v517_v25, %v517_v25 }
  0xf5   : > { %v575_v16 = vadd.f32 %v574_v13, %v453_v9  ;;  %v643_v18 = vadd.f32 %v642_v12, %v612_v11  ;;  %547 = vst [vmem:[%s995_s28 + $0x78] sm:$0xff] %v851_v14  ;;  %v616_v31 = vmul.f32 %v851_v14, %v851_v14  ;;  %563 = vst [vmem:[%s995_s28 + $0xf8] sm:$0xff] %v867_v30 }
  0xf6   : > { %v456_v19 = vpop.f32.mrf.mxu0  ;;  %v520_v35 = vpop.f32.mrf.mxu1  ;;  %v631_v13 = vmul.f32 %v866_v20, %v866_v20 }
  0xf7   : > { %v644_v21 = vadd.f32 %v643_v18, %v613_v17  ;;  %545 = vst [vmem:[%s995_s28 + $0x68] sm:$0xff] %v456_v19  ;;  %v576_v22 = vadd.f32 %v575_v16, %v456_v19  ;;  %v614_v23 = vmul.f32 %v456_v19, %v456_v19  ;;  %561 = vst [vmem:[%s995_s28 + $0xe8] sm:$0xff] %v520_v35 }
  0xf8   : > { %v630_v12 = vmul.f32 %v520_v35, %v520_v35  ;;  %v632_v16 = vmul.f32 %v867_v30, %v867_v30 }
  0xf9   : > { %v577_v27 = vadd.f32 %v850_v4, %v576_v22  ;;  %v645_v28 = vadd.f32 %v644_v21, %v614_v23  ;;  %v628_v4 = vmul.f32 %v1050_v10, %v1050_v10  ;;  %v670_v23 = vlaneseq }
  0xfb   : > { %v578_v32 = vadd.f32 %v851_v14, %v577_v27  ;;  %v646_v33 = vadd.f32 %v645_v28, %v615_v26  ;;  %v671_v28 = vshrl.u32 %v670_v23, 7 }
  0xfd   : > { %v647_v37 = vadd.f32 %v646_v33, %v616_v31  ;;  %v579_v38 = vadd.f32 %v578_v32, %v1005_v29  ;;  %vm673_vm2 = vcmp.eq.s32.totalorder %v671_v28, 1  ;;  %vm672_vm3 = vcmp.eq.s32.totalorder %v671_v28, 0 }
  0xff   : > { %v580_v40 = vadd.f32 %v579_v38, %v1015_v39  ;;  %v648_v42 = vadd.f32 %v647_v37, %v617_v36 }
 0x101   : > { %v581_v45 = vadd.f32 %v1000_v24, %v580_v40  ;;  %v649_v46 = vadd.f32 %v648_v42, %v618_v41  ;;  %v623_v24 = vmul.f32 %v1020_v44, %v1020_v44 }
 0x103   : > { %v650_v48 = vadd.f32 %v649_v46, %v619_v43  ;;  %v582_v50 = vadd.f32 %v1010_v34, %v581_v45  ;;  %v624_v34 = vmul.f32 %v1030_v54, %v1030_v54 }
 0x105   : > { %v583_v29 = vadd.f32 %v582_v50, %v1025_v49  ;;  %v651_v52 = vadd.f32 %v650_v48, %v620_v47 }
 0x107   : > { %v652_v39 = vadd.f32 %v651_v52, %v621_v51  ;;  %v584_v53 = vadd.f32 %v583_v29, %v1035_v59 }
 0x109   : > { %v585_v56 = vadd.f32 %v1020_v44, %v584_v53  ;;  %v653_v57 = vadd.f32 %v652_v39, %v622_v55 }
 0x10b   : > { %v654_v58 = vadd.f32 %v653_v57, %v623_v24  ;;  %v586_v60 = vadd.f32 %v1030_v54, %v585_v56 }
 0x10d   : > { %v587_v49 = vadd.f32 %v586_v60, %v1045_v5  ;;  %v655_v62 = vadd.f32 %v654_v58, %v624_v34 }
 0x10f   : > { %v656_v63 = vadd.f32 %v655_v62, %v625_v61  ;;  %v588_v59 = vadd.f32 %v587_v49, %v504_v15 }
 0x111   : > { %v589_v44 = vadd.f32 %v1040_v0, %v588_v59  ;;  %v657_v3 = vadd.f32 %v656_v63, %v626_v1 }
 0x113   : > { %v658_v6 = vadd.f32 %v657_v3, %v627_v2  ;;  %v590_v54 = vadd.f32 %v1050_v10, %v589_v44 }
 0x115   : > { %v591_v7 = vadd.f32 %v590_v54, %v517_v25  ;;  %v659_v5 = vadd.f32 %v658_v6, %v628_v4 }
 0x117   : > { %v660_v9 = vadd.f32 %v659_v5, %v629_v8  ;;  %v592_v11 = vadd.f32 %v591_v7, %v520_v35 }
 0x119   : > { %v593_v14 = vadd.f32 %v866_v20, %v592_v11  ;;  %v661_v15 = vadd.f32 %v660_v9, %v630_v12 }
 0x11b   : > { %v594_v0 = vadd.f32 %v867_v30, %v593_v14  ;;  %v662_v17 = vadd.f32 %v661_v15, %v631_v13 }
 0x11d   : > { %v595_v18 = vrot.slane %v594_v0, 4  ;;  %v663_v19 = vadd.f32 %v662_v17, %v632_v16 }
 0x11f   : > { %v596_v21 = vadd.f32 %v595_v18, %v594_v0  ;;  %v664_v22 = vrot.slane %v663_v19, 4 }
 0x121   : > { %v597_v10 = vrot.slane %v596_v21, 2  ;;  %v665_v26 = vadd.f32 %v664_v22, %v663_v19 }
 0x123   : > { %v598_v25 = vadd.f32 %v597_v10, %v596_v21  ;;  %v666_v27 = vrot.slane %v665_v26, 2 }
 0x125   : > { %v667_v31 = vadd.f32 %v666_v27, %v665_v26  ;;  %v599_v32 = vrot.slane %v598_v25, 1 }
 0x127   : > { %v668_v20 = vrot.slane %v667_v31, 1  ;;  %v600_v30 = vadd.f32 %v599_v32, %v598_v25 }
 0x129   : > { %v669_v33 = vadd.f32 %v668_v20, %v667_v31 }
 0x12b   : > { %v674_v35 = vsel %vm673_vm2, %v669_v33, 0.0 }
 0x12c   : > { %v675_v36 = vsel %vm672_vm3, %v600_v30, %v674_v35 }
 0x12d   : > { %676 = vst [vmem:[%s184_s5] sm:$0xff] %v675_v36 }
 0x12e PF: > { %s14_s12 = sadd.s32 1, %s909_s12  }
 0x12f   : > { %p11_p5 = scmp.ge.s32.totalorder %s14_s12, 4  }
 0x131   :  { %13 = sbr.rel (!%p11_p5) target bundleno = 1 (0x1), region = 70 }

// kernel: residual_pallas.7
= control target key start
LH: loop header
LB: loop body
LE: loop exit
PB: predicated region body
PF: predicated region fallthrough
CT: control target
= control target key end

     0   :  { %s585_s15 = smov 0   ;;  %s786_s0 = inlined_call_operand.vmem [shape: f32[512,128], index: 0, kind: input, shape index: {}]   ;;  %s787_s1 = inlined_call_operand.vmem [shape: f32[512,128], index: 1, kind: input, shape index: {}]   ;;  %s788_s2 = inlined_call_operand.vmem [shape: f32[1,128], index: 2, kind: input, shape index: {}]   ;;  %s789_s3 = inlined_call_operand.vmem [shape: f32[1,128], index: 3, kind: input, shape index: {}]   ;;  %s790_s4 = inlined_call_operand.vmem [shape: f32[512,128], index: 4, kind: output, shape index: {}]  }
   0x1 LB: > { %s529_s16 = sadd.s32 4294967295, %s558_s15   ;;  %p533_p0 = scmp.ge.s32.totalorder %s558_s15, 1  ;;  %s558_s15 = sphi %s585_s15, %s14_s15  }
   0x2   : > { %p174_p1 = scmp.lt.s32.totalorder %s558_s15, 3 }
   0x4   : > { %p175_p2 = pnand %p533_p0, %p174_p1 }
   0x5   : > { %s534_s17 = sshll.u32 (!%p175_p2), %s529_s16, 5 }
   0x6   : > { %178 = sbr.rel (%p175_p2) target bundleno = 53 (0x35), region = 36  ;;  %p206_p3 = scmp.lt.s32.totalorder (!%p175_p2), %s534_s17, 63 }
   0xb   : > { %s792_s17 = smov (!%p206_p3, %s534_s17), 63  ;;  %v598_v0 = vld [vmem:[%s788_s2] ss:$0 sm:$0xff] }
   0xc   : > { %s593_s18 = sshll.u32 %s792_s17, 3  ;;  %v616_v2 = vld [vmem:[%s789_s3] ss:$0 sm:$0xff] }
   0xd   : > { %s604_s23 = scalar_lea.vmem %s786_s0, %s593_s18  ;;  %s610_s26 = scalar_lea.vmem %s787_s1, %s593_s18 }
   0xe   : > { %v223_v1 = vld [vmem:[%s604_s23] sm:$0xff]  ;;  %v224_v3 = vld [vmem:[%s604_s23 + $0x8] sm:$0xff]  ;;  %v225_v7 = vld [vmem:[%s604_s23 + $0x10] sm:$0xff]  ;;  %s646_s5 = scalar_lea.vmem %s790_s4, %s593_s18 }
   0xf   : > { %v262_v4 = vmul.f32 %v598_v0, %v223_v1  ;;  %v333_v5 = vld [vmem:[%s610_s26] sm:$0xff]  ;;  %v263_v6 = vmul.f32 %v598_v0, %v224_v3  ;;  %v334_v8 = vld [vmem:[%s610_s26 + $0x8] sm:$0xff]  ;;  %v264_v9 = vmul.f32 %v598_v0, %v225_v7  ;;  %v226_v10 = vld [vmem:[%s604_s23 + $0x18] sm:$0xff] }
  0x10   : > { %v227_v11 = vld [vmem:[%s604_s23 + $0x20] sm:$0xff]  ;;  %v335_v14 = vld [vmem:[%s610_s26 + $0x10] sm:$0xff]  ;;  %v265_v15 = vmul.f32 %v598_v0, %v226_v10  ;;  %v336_v16 = vld [vmem:[%s610_s26 + $0x18] sm:$0xff] }
  0x11   : > { %v301_v12 = vadd.f32 %v616_v2, %v262_v4  ;;  %v302_v13 = vadd.f32 %v616_v2, %v263_v6  ;;  %v266_v17 = vmul.f32 %v598_v0, %v227_v11  ;;  %v228_v18 = vld [vmem:[%s604_s23 + $0x28] sm:$0xff]  ;;  %v303_v19 = vadd.f32 %v616_v2, %v264_v9  ;;  %v337_v20 = vld [vmem:[%s610_s26 + $0x20] sm:$0xff]  ;;  %v229_v22 = vld [vmem:[%s604_s23 + $0x30] sm:$0xff] }
  0x12   : > { %v267_v21 = vmul.f32 %v598_v0, %v228_v18  ;;  %v230_v23 = vld [vmem:[%s604_s23 + $0x38] sm:$0xff]  ;;  %v304_v26 = vadd.f32 %v616_v2, %v265_v15  ;;  %v338_v28 = vld [vmem:[%s610_s26 + $0x28] sm:$0xff]  ;;  %v268_v31 = vmul.f32 %v598_v0, %v229_v22  ;;  %v231_v33 = vld [vmem:[%s604_s23 + $0x40] sm:$0xff] }
  0x13   : > { %v365_v24 = vadd.f32 %v333_v5, %v301_v12  ;;  %v366_v25 = vadd.f32 %v334_v8, %v302_v13  ;;  %v305_v27 = vadd.f32 %v616_v2, %v266_v17  ;;  %v367_v29 = vadd.f32 %v335_v14, %v303_v19  ;;  %v232_v34 = vld [vmem:[%s604_s23 + $0x48] sm:$0xff]  ;;  %v339_v39 = vld [vmem:[%s610_s26 + $0x30] sm:$0xff]  ;;  %v340_v40 = vld [vmem:[%s610_s26 + $0x38] sm:$0xff] }
  0x14   : > { %v306_v30 = vadd.f32 %v616_v2, %v267_v21  ;;  %v269_v32 = vmul.f32 %v598_v0, %v230_v23  ;;  %v368_v37 = vadd.f32 %v336_v16, %v304_v26  ;;  %v233_v41 = vld [vmem:[%s604_s23 + $0x50] sm:$0xff]  ;;  %v307_v44 = vadd.f32 %v616_v2, %v268_v31  ;;  %v234_v46 = vld [vmem:[%s604_s23 + $0x58] sm:$0xff]  ;;  %v235_v47 = vld [vmem:[%s604_s23 + $0x60] sm:$0xff] }
  0x15   : > { %v397_v35 = vmax.f32 %v365_v24, 0.0  ;;  %v398_v36 = vmax.f32 %v366_v25, 0.0  ;;  %v369_v38 = vadd.f32 %v337_v20, %v305_v27  ;;  %v399_v42 = vmax.f32 %v367_v29, 0.0  ;;  %v236_v52 = vld [vmem:[%s604_s23 + $0x68] sm:$0xff]  ;;  %v341_v56 = vld [vmem:[%s610_s26 + $0x40] sm:$0xff]  ;;  %v343_v61 = vld [vmem:[%s610_s26 + $0x50] sm:$0xff] }
  0x16   : > { %v370_v43 = vadd.f32 %v338_v28, %v306_v30  ;;  %v308_v45 = vadd.f32 %v616_v2, %v269_v32  ;;  %v400_v48 = vmax.f32 %v368_v37, 0.0  ;;  %v270_v50 = vmul.f32 %v598_v0, %v231_v33  ;;  %v342_v57 = vld [vmem:[%s610_s26 + $0x48] sm:$0xff]  ;;  %v237_v1 = vld [vmem:[%s604_s23 + $0x70] sm:$0xff]  ;;  %v238_v3 = vld [vmem:[%s604_s23 + $0x78] sm:$0xff] }
  0x17   : > { %429 = vst [vmem:[%s646_s5] sm:$0xff] %v397_v35  ;;  %430 = vst [vmem:[%s646_s5 + $0x8] sm:$0xff] %v398_v36  ;;  %v401_v49 = vmax.f32 %v369_v38, 0.0  ;;  %v271_v51 = vmul.f32 %v598_v0, %v232_v34  ;;  %v371_v54 = vadd.f32 %v339_v39, %v307_v44  ;;  %v272_v58 = vmul.f32 %v598_v0, %v233_v41  ;;  %v344_v7 = vld [vmem:[%s610_s26 + $0x58] sm:$0xff]  ;;  %v345_v8 = vld [vmem:[%s610_s26 + $0x60] sm:$0xff] }
  0x18   : > { %431 = vst [vmem:[%s646_s5 + $0x10] sm:$0xff] %v399_v42  ;;  %v402_v53 = vmax.f32 %v370_v43, 0.0  ;;  %v372_v55 = vadd.f32 %v340_v40, %v308_v45  ;;  %432 = vst [vmem:[%s646_s5 + $0x18] sm:$0xff] %v400_v48  ;;  %v309_v59 = vadd.f32 %v616_v2, %v270_v50  ;;  %v273_v62 = vmul.f32 %v598_v0, %v234_v46  ;;  %v346_v14 = vld [vmem:[%s610_s26 + $0x68] sm:$0xff]  ;;  %v239_v19 = vld [vmem:[%s604_s23 + $0x80] sm:$0xff] }
  0x19   : > { %433 = vst [vmem:[%s646_s5 + $0x20] sm:$0xff] %v401_v49  ;;  %v310_v60 = vadd.f32 %v616_v2, %v271_v51  ;;  %v274_v63 = vmul.f32 %v598_v0, %v235_v47  ;;  %v403_v4 = vmax.f32 %v371_v54, 0.0  ;;  %v311_v6 = vadd.f32 %v616_v2, %v272_v58  ;;  %v240_v20 = vld [vmem:[%s604_s23 + $0x88] sm:$0xff]  ;;  %v347_v25 = vld [vmem:[%s610_s26 + $0x70] sm:$0xff]  ;;  %v348_v26 = vld [vmem:[%s610_s26 + $0x78] sm:$0xff] }
  0x1a   : > { %434 = vst [vmem:[%s646_s5 + $0x28] sm:$0xff] %v402_v53  ;;  %v404_v5 = vmax.f32 %v372_v55, 0.0  ;;  %v275_v9 = vmul.f32 %v598_v0, %v236_v52  ;;  %v373_v10 = vadd.f32 %v341_v56, %v309_v59  ;;  %v312_v12 = vadd.f32 %v616_v2, %v273_v62  ;;  %v241_v27 = vld [vmem:[%s604_s23 + $0x90] sm:$0xff]  ;;  %v242_v32 = vld [vmem:[%s604_s23 + $0x98] sm:$0xff]  ;;  %v243_v33 = vld [vmem:[%s604_s23 + $0xa0] sm:$0xff] }
  0x1b   : > { %v374_v11 = vadd.f32 %v342_v57, %v310_v60  ;;  %v313_v13 = vadd.f32 %v616_v2, %v274_v63  ;;  %435 = vst [vmem:[%s646_s5 + $0x30] sm:$0xff] %v403_v4  ;;  %v375_v15 = vadd.f32 %v343_v61, %v311_v6  ;;  %v276_v17 = vmul.f32 %v598_v0, %v237_v1  ;;  %v244_v38 = vld [vmem:[%s604_s23 + $0xa8] sm:$0xff]  ;;  %v349_v42 = vld [vmem:[%s610_s26 + $0x80] sm:$0xff]  ;;  %v351_v47 = vld [vmem:[%s610_s26 + $0x90] sm:$0xff] }
  0x1c   : > { %436 = vst [vmem:[%s646_s5 + $0x38] sm:$0xff] %v404_v5  ;;  %v314_v16 = vadd.f32 %v616_v2, %v275_v9  ;;  %v277_v18 = vmul.f32 %v598_v0, %v238_v3  ;;  %v405_v21 = vmax.f32 %v373_v10, 0.0  ;;  %v376_v23 = vadd.f32 %v344_v7, %v312_v12  ;;  %v350_v43 = vld [vmem:[%s610_s26 + $0x88] sm:$0xff]  ;;  %v245_v50 = vld [vmem:[%s604_s23 + $0xb0] sm:$0xff]  ;;  %v246_v51 = vld [vmem:[%s604_s23 + $0xb8] sm:$0xff] }
  0x1d   : > { %v406_v22 = vmax.f32 %v374_v11, 0.0  ;;  %v377_v24 = vadd.f32 %v345_v8, %v313_v13  ;;  %v407_v28 = vmax.f32 %v375_v15, 0.0  ;;  %v315_v30 = vadd.f32 %v616_v2, %v276_v17  ;;  %v352_v55 = vld [vmem:[%s610_s26 + $0x98] sm:$0xff]  ;;  %v353_v56 = vld [vmem:[%s610_s26 + $0xa0] sm:$0xff]  ;;  %v354_v62 = vld [vmem:[%s610_s26 + $0xa8] sm:$0xff] }
  0x1e   : > { %v378_v29 = vadd.f32 %v346_v14, %v314_v16  ;;  %v316_v31 = vadd.f32 %v616_v2, %v277_v18  ;;  %437 = vst [vmem:[%s646_s5 + $0x40] sm:$0xff] %v405_v21  ;;  %v408_v34 = vmax.f32 %v376_v23, 0.0  ;;  %v278_v36 = vmul.f32 %v598_v0, %v239_v19  ;;  %v247_v5 = vld [vmem:[%s604_s23 + $0xc0] sm:$0xff]  ;;  %v248_v6 = vld [vmem:[%s604_s23 + $0xc8] sm:$0xff]  ;;  %v355_v11 = vld [vmem:[%s610_s26 + $0xb0] sm:$0xff] }
  0x1f   : > { %438 = vst [vmem:[%s646_s5 + $0x48] sm:$0xff] %v406_v22  ;;  %v409_v35 = vmax.f32 %v377_v24, 0.0  ;;  %v279_v37 = vmul.f32 %v598_v0, %v240_v20  ;;  %439 = vst [vmem:[%s646_s5 + $0x50] sm:$0xff] %v407_v28  ;;  %v379_v40 = vadd.f32 %v347_v25, %v315_v30  ;;  %v280_v44 = vmul.f32 %v598_v0, %v241_v27  ;;  %v356_v12 = vld [vmem:[%s610_s26 + $0xb8] sm:$0xff]  ;;  %v249_v13 = vld [vmem:[%s604_s23 + $0xd0] sm:$0xff] }
  0x20   : > { %v410_v39 = vmax.f32 %v378_v29, 0.0  ;;  %v380_v41 = vadd.f32 %v348_v26, %v316_v31  ;;  %440 = vst [vmem:[%s646_s5 + $0x58] sm:$0xff] %v408_v34  ;;  %v317_v45 = vadd.f32 %v616_v2, %v278_v36  ;;  %v281_v48 = vmul.f32 %v598_v0, %v242_v32  ;;  %v250_v18 = vld [vmem:[%s604_s23 + $0xd8] sm:$0xff]  ;;  %v251_v19 = vld [vmem:[%s604_s23 + $0xe0] sm:$0xff]  ;;  %v252_v24 = vld [vmem:[%s604_s23 + $0xe8] sm:$0xff] }
  0x21   : > { %441 = vst [vmem:[%s646_s5 + $0x60] sm:$0xff] %v409_v35  ;;  %v318_v46 = vadd.f32 %v616_v2, %v279_v37  ;;  %v282_v49 = vmul.f32 %v598_v0, %v243_v33  ;;  %v411_v52 = vmax.f32 %v379_v40, 0.0  ;;  %v319_v54 = vadd.f32 %v616_v2, %v280_v44  ;;  %v357_v28 = vld [vmem:[%s610_s26 + $0xc0] sm:$0xff]  ;;  %v358_v29 = vld [vmem:[%s610_s26 + $0xc8] sm:$0xff]  ;;  %v359_v33 = vld [vmem:[%s610_s26 + $0xd0] sm:$0xff] }
  0x22   : > { %442 = vst [vmem:[%s646_s5 + $0x68] sm:$0xff] %v410_v39  ;;  %v412_v53 = vmax.f32 %v380_v41, 0.0  ;;  %v283_v57 = vmul.f32 %v598_v0, %v244_v38  ;;  %v381_v58 = vadd.f32 %v349_v42, %v317_v45  ;;  %v320_v60 = vadd.f32 %v616_v2, %v281_v48  ;;  %v253_v36 = vld [vmem:[%s604_s23 + $0xf0] sm:$0xff]  ;;  %v254_v37 = vld [vmem:[%s604_s23 + $0xf8] sm:$0xff]  ;;  %v361_v42 = vld [vmem:[%s610_s26 + $0xe0] sm:$0xff] }
  0x23   : > { %v382_v59 = vadd.f32 %v350_v43, %v318_v46  ;;  %v321_v61 = vadd.f32 %v616_v2, %v282_v49  ;;  %443 = vst [vmem:[%s646_s5 + $0x70] sm:$0xff] %v411_v52  ;;  %v383_v63 = vadd.f32 %v351_v47, %v319_v54  ;;  %v284_v3 = vmul.f32 %v598_v0, %v245_v50  ;;  %v360_v41 = vld [vmem:[%s610_s26 + $0xd8] sm:$0xff]  ;;  %v362_v48 = vld [vmem:[%s610_s26 + $0xe8] sm:$0xff] }
  0x24   : > { %444 = vst [vmem:[%s646_s5 + $0x78] sm:$0xff] %v412_v53  ;;  %v322_v1 = vadd.f32 %v616_v2, %v283_v57  ;;  %v285_v4 = vmul.f32 %v598_v0, %v246_v51  ;;  %v413_v7 = vmax.f32 %v381_v58, 0.0  ;;  %v384_v9 = vadd.f32 %v352_v55, %v320_v60  ;;  %v363_v57 = vld [vmem:[%s610_s26 + $0xf0] sm:$0xff]  ;;  %v364_v58 = vld [vmem:[%s610_s26 + $0xf8] sm:$0xff] }
  0x25   : > { %v414_v8 = vmax.f32 %v382_v59, 0.0  ;;  %v385_v10 = vadd.f32 %v353_v56, %v321_v61  ;;  %v415_v14 = vmax.f32 %v383_v63, 0.0  ;;  %v323_v16 = vadd.f32 %v616_v2, %v284_v3 }
  0x26   : > { %v386_v15 = vadd.f32 %v354_v62, %v322_v1  ;;  %v324_v17 = vadd.f32 %v616_v2, %v285_v4  ;;  %445 = vst [vmem:[%s646_s5 + $0x80] sm:$0xff] %v413_v7  ;;  %v416_v20 = vmax.f32 %v384_v9, 0.0  ;;  %v286_v22 = vmul.f32 %v598_v0, %v247_v5 }
  0x27   : > { %446 = vst [vmem:[%s646_s5 + $0x88] sm:$0xff] %v414_v8  ;;  %v417_v21 = vmax.f32 %v385_v10, 0.0  ;;  %v287_v23 = vmul.f32 %v598_v0, %v248_v6  ;;  %447 = vst [vmem:[%s646_s5 + $0x90] sm:$0xff] %v415_v14  ;;  %v387_v26 = vadd.f32 %v355_v11, %v323_v16  ;;  %v288_v30 = vmul.f32 %v598_v0, %v249_v13 }
  0x28   : > { %v418_v25 = vmax.f32 %v386_v15, 0.0  ;;  %v388_v27 = vadd.f32 %v356_v12, %v324_v17  ;;  %448 = vst [vmem:[%s646_s5 + $0x98] sm:$0xff] %v416_v20  ;;  %v325_v31 = vadd.f32 %v616_v2, %v286_v22  ;;  %v289_v34 = vmul.f32 %v598_v0, %v250_v18 }
  0x29   : > { %449 = vst [vmem:[%s646_s5 + $0xa0] sm:$0xff] %v417_v21  ;;  %v326_v32 = vadd.f32 %v616_v2, %v287_v23  ;;  %v290_v35 = vmul.f32 %v598_v0, %v251_v19  ;;  %v419_v38 = vmax.f32 %v387_v26, 0.0  ;;  %v327_v40 = vadd.f32 %v616_v2, %v288_v30 }
  0x2a   : > { %450 = vst [vmem:[%s646_s5 + $0xa8] sm:$0xff] %v418_v25  ;;  %v420_v39 = vmax.f32 %v388_v27, 0.0  ;;  %v291_v43 = vmul.f32 %v598_v0, %v252_v24  ;;  %v389_v44 = vadd.f32 %v357_v28, %v325_v31  ;;  %v328_v46 = vadd.f32 %v616_v2, %v289_v34 }
  0x2b   : > { %v390_v45 = vadd.f32 %v358_v29, %v326_v32  ;;  %v329_v47 = vadd.f32 %v616_v2, %v290_v35  ;;  %451 = vst [vmem:[%s646_s5 + $0xb0] sm:$0xff] %v419_v38  ;;  %v391_v49 = vadd.f32 %v359_v33, %v327_v40  ;;  %v292_v51 = vmul.f32 %v598_v0, %v253_v36 }
  0x2c   : > { %452 = vst [vmem:[%s646_s5 + $0xb8] sm:$0xff] %v420_v39  ;;  %v330_v50 = vadd.f32 %v616_v2, %v291_v43  ;;  %v293_v52 = vmul.f32 %v598_v0, %v254_v37  ;;  %v421_v53 = vmax.f32 %v389_v44, 0.0  ;;  %v392_v55 = vadd.f32 %v360_v41, %v328_v46 }
  0x2d   : > { %v422_v54 = vmax.f32 %v390_v45, 0.0  ;;  %v393_v56 = vadd.f32 %v361_v42, %v329_v47  ;;  %v423_v59 = vmax.f32 %v391_v49, 0.0  ;;  %v331_v61 = vadd.f32 %v616_v2, %v292_v51 }
  0x2e   : > { %v394_v60 = vadd.f32 %v362_v48, %v330_v50  ;;  %v332_v62 = vadd.f32 %v616_v2, %v293_v52  ;;  %453 = vst [vmem:[%s646_s5 + $0xc0] sm:$0xff] %v421_v53  ;;  %v424_v0 = vmax.f32 %v392_v55, 0.0 }
  0x2f   : > { %454 = vst [vmem:[%s646_s5 + $0xc8] sm:$0xff] %v422_v54  ;;  %v425_v63 = vmax.f32 %v393_v56, 0.0  ;;  %455 = vst [vmem:[%s646_s5 + $0xd0] sm:$0xff] %v423_v59  ;;  %v395_v3 = vadd.f32 %v363_v57, %v331_v61 }
  0x30   : > { %v426_v1 = vmax.f32 %v394_v60, 0.0  ;;  %v396_v4 = vadd.f32 %v364_v58, %v332_v62  ;;  %456 = vst [vmem:[%s646_s5 + $0xd8] sm:$0xff] %v424_v0 }
  0x31   : > { %457 = vst [vmem:[%s646_s5 + $0xe0] sm:$0xff] %v425_v63  ;;  %v427_v5 = vmax.f32 %v395_v3, 0.0 }
  0x32   : > { %458 = vst [vmem:[%s646_s5 + $0xe8] sm:$0xff] %v426_v1  ;;  %v428_v6 = vmax.f32 %v396_v4, 0.0 }
  0x33   : > { %459 = vst [vmem:[%s646_s5 + $0xf0] sm:$0xff] %v427_v5 }
  0x34   : > { %460 = vst [vmem:[%s646_s5 + $0xf8] sm:$0xff] %v428_v6 }
  0x35 PF: > { %s14_s15 = sadd.s32 1, %s558_s15  }
  0x36   : > { %p11_p4 = scmp.ge.s32.totalorder %s14_s15, 4  }
  0x38   :  { %13 = sbr.rel (!%p11_p4) target bundleno = 1 (0x1), region = 69 }

</bundles_post_ra>
